<compile_context>
chip_gen: v7x
topology: tpu7x:2x2x1
jax: 0.10.0
libtpu: 0.0.40
codegen_flags: <defaults>
</compile_context>

<pallas_src>
import jax
import jax.numpy as jnp
from jax.experimental import pallas as pl
from jax.experimental.pallas import tpu as pltpu

_LANE = 128


def _sublane_multiple(dtype) -> int:
    itemsize = jnp.dtype(dtype).itemsize
    return {4: 8, 2: 16, 1: 32}.get(itemsize, 8)


def _pick_tiles(R, HW, dtype, budget_bytes=4 * 1024 * 1024):
    """(row_tile, lane_tile) for the streaming kernel, sized by a byte budget."""
    itemsize = jnp.dtype(dtype).itemsize
    sub = _sublane_multiple(dtype)
    target_elems = max(budget_bytes // itemsize, sub * _LANE)

    # Lane axis first (lane-dense stores, long contiguous DMA bursts); leave room
    # for at least one sublane group of rows inside the budget.
    lane_cap = max(_LANE, (target_elems // sub) // _LANE * _LANE)
    lane_tile = HW if HW <= lane_cap else lane_cap

    row_cap = max(sub, (target_elems // lane_tile) // sub * sub)
    row_tile = R if R <= row_cap else row_cap
    return row_tile, lane_tile


# ---------------------------------------------------------------------------
# Kernel 1: fused tiny MLPs (grid=()) -> (B, 2C) with [mu | sigma] columns
# ---------------------------------------------------------------------------
def film_mlp_kernel(lmbda_ref, w1_ref, b1_ref, w2_ref, b2_ref, out_ref):
    h = jnp.dot(lmbda_ref[...], w1_ref[...], preferred_element_type=jnp.float32)
    h = jnp.maximum(h + b1_ref[...], 0.0)
    out = jnp.dot(h, w2_ref[...], preferred_element_type=jnp.float32)
    out_ref[...] = out + b2_ref[...]


# ---------------------------------------------------------------------------
# Kernel 2: streamed FiLM modulation, tiled over (B*C rows, H*W lanes)
# ---------------------------------------------------------------------------
def film_mod_kernel(ms_ref, x_ref, o_ref):
    # ms: (row_tile, 2) -- column 0 = sigma, column 1 = mu; broadcast over lanes.
    ms = ms_ref[...]
    sigma = ms[:, 0:1]
    mu = ms[:, 1:2]
    y = x_ref[...].astype(jnp.float32) * sigma + mu
    o_ref[...] = y.astype(o_ref.dtype)


# ---------------------------------------------------------------------------
# Wrapper
# ---------------------------------------------------------------------------
def film_block(x_nchw, lmbda, params, *, donate_x=False):
    """x_nchw: (B, C, H, W); lmbda: (B, n_input). Returns (B, C, H, W)."""
    B, C, H, W = x_nchw.shape
    HW = H * W
    R = B * C
    out_dtype = x_nchw.dtype

    (wmu1, bmu1, wmu2, bmu2, wsg1, bsg1, wsg2, bsg2) = params
    n_hidden = wmu1.shape[1]
    assert wmu2.shape[1] == C, "n_output of the MLPs must equal channel dim of x"

    # ---- 1) fused tiny MLPs: one Pallas call, 2 MXU GEMMs instead of 4 ------
    # W1 = [wmu1 | wsg1], single ReLU, block-diagonal W2 = [[wmu2, 0], [0, wsg2]].
    w1 = jnp.concatenate([wmu1, wsg1], axis=1).astype(jnp.float32)        # (n_in, 2H)
    b1 = jnp.concatenate([bmu1, bsg1], axis=1).astype(jnp.float32)        # (1, 2H)
    w2 = jnp.zeros((2 * n_hidden, 2 * C), jnp.float32)
    w2 = w2.at[:n_hidden, :C].set(wmu2).at[n_hidden:, C:].set(wsg2)       # (2H, 2C)
    b2 = jnp.concatenate([bmu2, bsg2], axis=1).astype(jnp.float32)        # (1, 2C)

    full = lambda shape: pl.BlockSpec(shape, lambda: (0,) * len(shape))
    mu_sigma = pl.pallas_call(
        film_mlp_kernel,
        out_shape=jax.ShapeDtypeStruct((B, 2 * C), jnp.float32),
        grid=(),
        in_specs=[full(lmbda.shape), full(w1.shape), full(b1.shape),
                  full(w2.shape), full(b2.shape)],
        out_specs=full((B, 2 * C)),
    )(lmbda.astype(jnp.float32), w1, b1, w2, b2)
    mu = mu_sigma[:, :C]                     # (B, C)
    sigma = mu_sigma[:, C:]                  # (B, C)

    # Pack per-row (sigma, mu) pairs: (B*C, 2); tiny wrapper-side op (few KB).
    ms = jnp.stack([sigma, mu], axis=-1).reshape(R, 2)

    # ---- 2) streaming FiLM modulation over x viewed as (B*C, H*W) -----------
    x2 = x_nchw.reshape(R, HW)               # free view: rows->sublanes, HW->lanes
    row_tile, lane_tile = _pick_tiles(R, HW, x2.dtype)
    grid = (pl.cdiv(R, row_tile), pl.cdiv(HW, lane_tile))

    cost = pl.CostEstimate(
        flops=2 * R * HW,
        transcendentals=0,
        bytes_accessed=(R * HW * (x2.dtype.itemsize + jnp.dtype(out_dtype).itemsize)
                        + ms.size * ms.dtype.itemsize),
    )
    io_aliases = {}
    if donate_x and jnp.dtype(out_dtype) == x2.dtype:
        io_aliases = {1: 0}                  # reuse x's HBM buffer for the output

    # TODO(synk): if profiling shows exposed DMA latency on v7x, add
    # pipeline_mode=pl.Buffered(3) on the x BlockSpec instead of growing tiles.
    out2 = pl.pallas_call(
        film_mod_kernel,
        out_shape=jax.ShapeDtypeStruct((R, HW), out_dtype),
        grid=grid,
        in_specs=[
            pl.BlockSpec((row_tile, 2), lambda i, j: (i, 0)),            # [sigma|mu]
            pl.BlockSpec((row_tile, lane_tile), lambda i, j: (i, j)),    # x
        ],
        out_specs=pl.BlockSpec((row_tile, lane_tile), lambda i, j: (i, j)),
        compiler_params=pltpu.CompilerParams(
            dimension_semantics=("parallel", "parallel"),
            vmem_limit_bytes=32 * 1024 * 1024,
        ),
        cost_estimate=cost,
        input_output_aliases=io_aliases,
    )(ms, x2)

    return out2.reshape(B, C, H, W)


# ---------------------------------------------------------------------------
# Params / reference / test harness
# ---------------------------------------------------------------------------
def init_params(key, n_input, n_output, n_hidden):
    """torch.nn.Linear-like init; weights stored transposed as (in, out)."""
    ks = jax.random.split(key, 8)
    s1 = 1.0 / jnp.sqrt(n_input)
    s2 = 1.0 / jnp.sqrt(n_hidden)
    wmu1 = jax.random.uniform(ks[0], (n_input, n_hidden), jnp.float32, -s1, s1)
    bmu1 = jax.random.uniform(ks[1], (1, n_hidden), jnp.float32, -s1, s1)
    wmu2 = jax.random.uniform(ks[2], (n_hidden, n_output), jnp.float32, -s2, s2)
    bmu2 = jax.random.uniform(ks[3], (1, n_output), jnp.float32, -s2, s2)
    wsg1 = jax.random.uniform(ks[4], (n_input, n_hidden), jnp.float32, -s1, s1)
    bsg1 = jax.random.uniform(ks[5], (1, n_hidden), jnp.float32, -s1, s1)
    wsg2 = jax.random.uniform(ks[6], (n_hidden, n_output), jnp.float32, -s2, s2)
    bsg2 = jax.random.uniform(ks[7], (1, n_output), jnp.float32, -s2, s2)
    return (wmu1, bmu1, wmu2, bmu2, wsg1, bsg1, wsg2, bsg2)


def film_block_ref(x_nchw, lmbda, params):
    """Pure-JAX reference matching the PyTorch forward."""
    (wmu1, bmu1, wmu2, bmu2, wsg1, bsg1, wsg2, bsg2) = params
    mu = jnp.maximum(lmbda @ wmu1 + bmu1, 0.0) @ wmu2 + bmu2
    sigma = jnp.maximum(lmbda @ wsg1 + bsg1, 0.0) @ wsg2 + bsg2
    return x_nchw * sigma[:, :, None, None] + mu[:, :, None, None]


if __name__ == "__main__":
    B, C_out, H, W = 2, 4, 16, 16      # x: (B, n_output, H, W)
    n_input, n_hidden = 4, 32          # lmbda: (B, n_input)

    key = jax.random.PRNGKey(0)
    kx, kl, kp = jax.random.split(key, 3)
    x = jax.random.normal(kx, (B, C_out, H, W), jnp.float32)
    lmbda = jax.random.normal(kl, (B, n_input), jnp.float32)
    params = init_params(kp, n_input, C_out, n_hidden)

    out = jax.block_until_ready(film_block(x, lmbda, params))
    ref = film_block_ref(x, lmbda, params)
    assert out.shape == (B, C_out, H, W)
    assert jnp.allclose(out, ref, atol=1e-5, rtol=1e-5), float(jnp.max(jnp.abs(out - ref)))

    print("KERNEL_OK")
</pallas_src>

<mosaic_0001>
module attributes {stable_mosaic.version = 11 : i64} {
  func.func @film_mlp_kernel(%arg0: memref<2x4xf32, #tpu.memory_space<vmem>>, %arg1: memref<4x64xf32, #tpu.memory_space<vmem>>, %arg2: memref<1x64xf32, #tpu.memory_space<vmem>>, %arg3: memref<64x8xf32, #tpu.memory_space<vmem>>, %arg4: memref<1x8xf32, #tpu.memory_space<vmem>>, %arg5: memref<2x8xf32, #tpu.memory_space<vmem>>) attributes {dimension_semantics = [], scalar_prefetch = 0 : i64, scratch_operands = 0 : i64, tpu.core_type = #tpu.core_type<tc>} {
    %c0 = arith.constant 0 : index
    %c0_0 = arith.constant 0 : index
    %0 = vector.load %arg0[%c0, %c0_0] : memref<2x4xf32, #tpu.memory_space<vmem>>, vector<2x4xf32>
    %c0_1 = arith.constant 0 : index
    %c0_2 = arith.constant 0 : index
    %1 = vector.load %arg1[%c0_1, %c0_2] : memref<4x64xf32, #tpu.memory_space<vmem>>, vector<4x64xf32>
    %cst = arith.constant dense<0.000000e+00> : vector<2x64xf32>
    %2 = tpu.matmul %0, %1, %cst {dimension_numbers = #tpu.dot_dimension_numbers<[1], [0], [0], [1], [0, 0, 1, 1], [], []>} : vector<2x4xf32>, vector<4x64xf32>, vector<2x64xf32> -> vector<2x64xf32>
    %c0_3 = arith.constant 0 : index
    %c0_4 = arith.constant 0 : index
    %3 = vector.load %arg2[%c0_3, %c0_4] : memref<1x64xf32, #tpu.memory_space<vmem>>, vector<1x64xf32>
    %4 = vector.broadcast %3 : vector<1x64xf32> to vector<2x64xf32>
    %5 = arith.addf %2, %4 : vector<2x64xf32>
    %cst_5 = arith.constant 0.000000e+00 : f32
    %6 = vector.broadcast %cst_5 : f32 to vector<2x64xf32>
    %7 = arith.maximumf %5, %6 : vector<2x64xf32>
    %c0_6 = arith.constant 0 : index
    %c0_7 = arith.constant 0 : index
    %8 = vector.load %arg3[%c0_6, %c0_7] : memref<64x8xf32, #tpu.memory_space<vmem>>, vector<64x8xf32>
    %cst_8 = arith.constant dense<0.000000e+00> : vector<2x8xf32>
    %9 = tpu.matmul %7, %8, %cst_8 {dimension_numbers = #tpu.dot_dimension_numbers<[1], [0], [0], [1], [0, 0, 1, 1], [], []>} : vector<2x64xf32>, vector<64x8xf32>, vector<2x8xf32> -> vector<2x8xf32>
    %c0_9 = arith.constant 0 : index
    %c0_10 = arith.constant 0 : index
    %10 = vector.load %arg4[%c0_9, %c0_10] : memref<1x8xf32, #tpu.memory_space<vmem>>, vector<1x8xf32>
    %11 = vector.broadcast %10 : vector<1x8xf32> to vector<2x8xf32>
    %12 = arith.addf %9, %11 : vector<2x8xf32>
    %c0_11 = arith.constant 0 : index
    %c0_12 = arith.constant 0 : index
    %13 = vector.load %arg5[%c0_11, %c0_12] : memref<2x8xf32, #tpu.memory_space<vmem>>, vector<2x8xf32>
    tpu.vector_store %arg5[%c0_11, %c0_12], %12 {strides = array<i32>} : memref<2x8xf32, #tpu.memory_space<vmem>>, vector<2x8xf32>,
    return
  }
}

</mosaic_0001>

<bundles_post_ra>
// kernel: tpu_custom_call.1
= control target key start
LH: loop header
LB: loop body
LE: loop exit
PB: predicated region body
PF: predicated region fallthrough
CT: control target
= control target key end

     0   :  { %vm34_vm0 = vcmask 1043456   ;;  %vm30_vm1 = vcmask 31744   ;;  %v294_v1 = vmov 0.0   ;;  %vm295_vm2 = vmmov 0   ;;  %s376_s0 = inlined_call_operand.vmem [shape: f32[2,4], index: 0, kind: input, shape index: {}]   ;;  %s377_s1 = inlined_call_operand.vmem [shape: f32[4,64], index: 1, kind: input, shape index: {}]   ;;  %s378_s2 = inlined_call_operand.vmem [shape: f32[1,64], index: 2, kind: input, shape index: {}]   ;;  %s379_s3 = inlined_call_operand.vmem [shape: f32[64,8], index: 3, kind: input, shape index: {}]   ;;  %s380_s4 = inlined_call_operand.vmem [shape: f32[1,8], index: 4, kind: input, shape index: {}]   ;;  %s381_s5 = inlined_call_operand.hbm [shape: f32[2,8], index: 5, kind: output, shape index: {}]  }
   0x1   :  { %v22_v0 = vld [vmem:[%s377_s1] sm:$0xf]  ;;  %230 = vmatprep.subr.mxu0 %v294_v1  ;;  %232 = vmatprep.mubr.msk.f32.mxu0 %vm295_vm2, %v294_v1  ;;  %v110_v4 = vld [vmem:[%s379_s3 + $0x8] sm:$0xff]  ;;  %v296_v5 = vmov 0.0|0.0   ;;  %v111_v7 = vld [vmem:[%s379_s3 + $0x10] sm:$0xff] }
   0x2   :  { %v21_v2 = vld [vmem:[%s376_s0] sm:$0x3]  ;;  %231 = vmatpush3.msk.msra.mxu0 %vm34_vm0, %v22_v0  ;;  %254 = vmatprep.subr.bf16.mxu1 %v296_v5  ;;  %v112_v8 = vld [vmem:[%s379_s3 + $0x18] sm:$0xff] }
   0x3   :  { %v109_v3 = vld [vmem:[%s379_s3] sm:$0xff]  ;;  %233 = vmatmul.mubr.msk.f32.vlgmr.msra.gmra.mrb[0].mxu0 %vm30_vm1, %v21_v2  ;;  %251 = vmatprep.mubr.msk.f32.mxu1 %vm295_vm2, %v294_v1 }
   0x4   :  { %v255_v6 = vpack.c.bf16 %v110_v4, %v109_v3 }
   0x5   :  { %10 = vsyncpa [#allocation3], 0  ;;  %v258_v9 = vpack.c.bf16 %v112_v8, %v111_v7  ;;  %v113_v10 = vld [vmem:[%s379_s3 + $0x20] sm:$0xff]  ;;  %v114_v11 = vld [vmem:[%s379_s3 + $0x28] sm:$0xff]  ;;  %vm124_vm3 = vcmask 523264   ;;  %s297_s15 = smov [#allocation2]  }
   0x6   :  { %256 = vmatpush3.bf16.msra.mxu1 %v255_v6  ;;  %v261_v12 = vpack.c.bf16 %v114_v11, %v113_v10  ;;  %v115_v13 = vld [vmem:[%s379_s3 + $0x30] sm:$0xff]  ;;  %v116_v14 = vld [vmem:[%s379_s3 + $0x38] sm:$0xff]  ;;  %v214_v16 = vld [vmem:[%s378_s2] ss:$0 sm:$0xff]  ;;  %s206_s16 = sshll.u32 %s297_s15, 4  ;;  %vm198_vm4 = vcmask 58368   ;;  %s207_s16 = int_to_ptr.vmem [resolvable:$true] %s206_s16 }
   0x7   :  { %257 = vmatprep.subr.bf16.mxu1 %v296_v5  ;;  %v264_v15 = vpack.c.bf16 %v116_v14, %v115_v13  ;;  %v217_v21 = vld [vmem:[%s380_s4] ss:$0 sm:$0xff]  ;;  %s270_s3 = scalar_lea.vmem %s207_s16, 32  ;;  %p275_p1 = scmp.lt.s32.totalorder %s207_s16, %s207_s16 }
   0x8   :  { %p271_p0 = scmp.ne.s32.totalorder %s207_s16, %s270_s3  ;;  %p276_p2 = scmp.lt.s32.totalorder %s270_s3, %s270_s3 }
   0xa   :  { %259 = vmatpush3.bf16.msra.mxu1 %v258_v9  ;;  %p277_p3 = por %p276_p2, %p275_p1 }
   0xb   :  { %260 = vmatprep.subr.bf16.mxu1 %v296_v5 }
   0xc   :  { %p278_p4 = pnand %p277_p3, %p271_p0 }
   0xe   :  { %262 = vmatpush3.bf16.msra.mxu1 %v261_v12 }
   0xf   :  { %263 = vmatprep.subr.bf16.mxu1 %v296_v5 }
  0x12   :  { %265 = vmatpush3.bf16.msra.mxu1 %v264_v15 }
  0xd6   :  { %v104_v17 = vpop.f32.mrb[0].mxu0 }
  0xd7   :  { %v105_v18 = vadd.f32 %v214_v16, %v104_v17  ;;  %v234_v19 = vpop.f32.mrb[1].mxu0 }
  0xd9   :  { %v108_v20 = vmax.f32 %v105_v18, 0.0 }
  0xdb   :  { %252 = vmatmul.mubr.msk.f32.vlgmr.msra.gmra.mrb[0].mxu1 %vm124_vm3, %v108_v20 }
 0x1ae   :  { %v194_v22 = vpop.f32.mrb[0].mxu1 }
 0x1af   :  { %v195_v23 = vadd.f32 %v217_v21, %v194_v22  ;;  %v253_v24 = vpop.f32.mrb[1].mxu1 }
 0x1b1   :  { %199 = vst.msk [vmem:[#allocation2] sm:$0x3] %vm198_vm4, %v195_v23 }
 0x1b2   :  { %281 = shalt.err (!%p278_p4)
}
 0x1b3   :  { %s282_s18 = scalar_lea.hbm %s381_s5, 32 }
 0x1b4   :  { %p283_p5 = scmp.ne.s32.totalorder %s381_s5, %s282_s18  ;;  %p286_p6 = scmp.lt.u32.totalorder %s282_s18, %s381_s5 }
 0x1b6   :  { %p288_p7 = pnand %p286_p6, %p283_p5 }
 0x1b8   :  { %291 = shalt.err (!%p288_p7)
}
 0x1b9   :  { %209 = dma.vmem_to_hbm [thread:$0]  %s207_s16, 32, %s381_s5, [#allocation3]  }
 0x1ba   :  { %292 = dma.done.wait [#allocation3], 32  }
 0x1bb   :  { %293 = vsyncadd [#allocation3], 4294967264 }
 0x1bc   :  { %213 = vsyncpa [#allocation3], 1 }

</bundles_post_ra>
